<compile_context>
chip_gen: v7x
topology: tpu7x:2x2x1
jax: 0.10.0
libtpu: 0.0.40
codegen_flags: <defaults>
</compile_context>

<pallas_src>
import jax
import jax.numpy as jnp
from jax.experimental import pallas as pl
from jax.experimental.pallas import tpu as pltpu

NEG_SLOPE = 0.01  # torch F.leaky_relu default negative_slope


def _leaky_relu(x):
    # max(x, a*x) == leaky_relu(x) for 0 < a < 1.
    return jnp.maximum(x, NEG_SLOPE * x)


def _round_up(x, m):
    return ((x + m - 1) // m) * m


def _make_kernel(n_fc, enc_in_pad, enc_out, widths):
    """Transposed kernel body; every activation is (features, tb)."""

    def kernel(*refs):
        x_ref, wenc_ref, w1_ref = refs[:3]
        fc_w_refs = refs[3:3 + (n_fc - 1)]
        wh_ref, bias_ref, out_ref = refs[3 + (n_fc - 1):]

        x = x_ref[...]                    # (enc_in_pad + latent_dim, tb)
        biases = bias_ref[...]            # (max_w, n_fc + 2)

        x_enc = x[:enc_in_pad, :]         # [next ; action ; prev ; zero-pad]
        latent = x[enc_in_pad:, :]        # latent rows (pass-through)

        # fused state/action/state encoders: ONE block-diagonal matmul
        henc = _leaky_relu(
            jnp.dot(wenc_ref[...], x_enc, preferred_element_type=jnp.float32)
            + biases[:enc_out, 0:1])      # rows = [hns ; ha ; hps]

        # first fc layer over the concat [latent ; hns ; ha ; hps]
        h = jnp.concatenate([latent, henc], axis=0)
        h = _leaky_relu(
            jnp.dot(w1_ref[...], h, preferred_element_type=jnp.float32)
            + biases[:widths[0], 1:2])

        # remaining fc layers
        for li in range(n_fc - 1):
            h = _leaky_relu(
                jnp.dot(fc_w_refs[li][...], h,
                        preferred_element_type=jnp.float32)
                + biases[:widths[li + 1], 2 + li:3 + li])

        # fused heads: row 0 = mean, row 1 = logvar -> lane-dense (2, tb) store
        out_ref[...] = (
            jnp.dot(wh_ref[...], h, preferred_element_type=jnp.float32)
            + biases[:2, n_fc + 1:n_fc + 2])

    return kernel


def init_params(key, latent_dim, state_dim, state_embed_dim, action_dim,
                action_embed_dim, layers):
    """Deterministic synthetic parameters, weights stored as (in, out)."""
    params = {
        "widths": tuple(layers),
        "latent_dim": latent_dim,
        "state_dim": state_dim,
        "state_embed_dim": state_embed_dim,
        "action_dim": action_dim,
        "action_embed_dim": action_embed_dim,
    }
    keys = jax.random.split(key, 10 + 2 * len(layers))
    k = iter(keys)

    def w(key_, shape):
        return (0.1 * jax.random.normal(key_, shape)).astype(jnp.float32)

    # encoders (shared state encoder for next & prev)
    params["ws"] = w(next(k), (state_dim, state_embed_dim))
    params["bs"] = w(next(k), (1, state_embed_dim))
    params["wa"] = w(next(k), (action_dim, action_embed_dim))
    params["ba"] = w(next(k), (1, action_embed_dim))

    # first fc layer over the concat [latent | hns | ha | hps]
    cat_dim = latent_dim + state_embed_dim + action_embed_dim + state_embed_dim
    params["w1"] = w(next(k), (cat_dim, layers[0]))
    params["b1"] = w(next(k), (1, layers[0]))

    prev = layers[0]
    for li, width in enumerate(layers[1:]):
        params[f"w_fc{li}"] = w(next(k), (prev, width))
        params[f"b_fc{li}"] = w(next(k), (1, width))
        prev = width

    # heads
    params["wm"] = w(next(k), (prev, 1))
    params["bm"] = w(next(k), (1, 1))
    params["wv"] = w(next(k), (prev, 1))
    params["bv"] = w(next(k), (1, 1))
    return params


def pack_params(params):
    """Host-side (one-off) fusion of weights & biases for the kernel."""
    widths = params["widths"]
    n_fc = len(widths)
    ld = params["latent_dim"]
    sd = params["state_dim"]
    ad = params["action_dim"]
    sed = params["state_embed_dim"]
    aed = params["action_embed_dim"]

    enc_in = 2 * sd + ad
    enc_in_pad = _round_up(enc_in, 8)      # sublane-align the in-kernel slice
    enc_out = 2 * sed + aed

    # Block-diagonal fused encoder weight (out, in):
    #   input rows  [next | action | prev | zero-pad]
    #   output rows [hns  | ha     | hps]   (matches torch's cat order)
    wenc = jnp.zeros((enc_out, enc_in_pad), jnp.float32)
    wenc = wenc.at[:sed, :sd].set(params["ws"].T)
    wenc = wenc.at[sed:sed + aed, sd:sd + ad].set(params["wa"].T)
    wenc = wenc.at[sed + aed:, sd + ad:sd + ad + sd].set(params["ws"].T)

    # single bias pack (column per layer): [enc | fc1 | fc... | head]
    max_w = max(enc_out, max(widths), 2)
    bias = jnp.zeros((max_w, n_fc + 2), jnp.float32)
    b_enc = jnp.concatenate([params["bs"].reshape(-1),
                             params["ba"].reshape(-1),
                             params["bs"].reshape(-1)])
    bias = bias.at[:enc_out, 0].set(b_enc)
    bias = bias.at[:widths[0], 1].set(params["b1"].reshape(-1))
    for li in range(n_fc - 1):
        bias = bias.at[:widths[li + 1], 2 + li].set(
            params[f"b_fc{li}"].reshape(-1))
    bias = bias.at[:2, n_fc + 1].set(
        jnp.concatenate([params["bm"].reshape(-1), params["bv"].reshape(-1)]))

    return {
        "n_fc": n_fc,
        "widths": widths,
        "latent_dim": ld,
        "state_dim": sd,
        "action_dim": ad,
        "enc_in": enc_in,
        "enc_in_pad": enc_in_pad,
        "enc_out": enc_out,
        "wenc": wenc,
        "w1": params["w1"].T,                                       # (h0, cat)
        "w_fc": [params[f"w_fc{li}"].T for li in range(n_fc - 1)],  # (out, in)
        "wh": jnp.concatenate([params["wm"].T, params["wv"].T], axis=0),
        "bias": bias,
    }


def reward_decoder_forward(packed, latent_state, next_state, prev_state,
                           actions, *, tb=None):
    """Pallas implementation of RewardDecoderProbabilistic.forward."""
    n_fc = packed["n_fc"]
    B = latent_state.shape[0]
    ld = packed["latent_dim"]
    enc_in = packed["enc_in"]
    enc_in_pad = packed["enc_in_pad"]
    in_rows = enc_in_pad + ld

    # Lane-aligned batch tile (multiple of 128).  Cap 2048 to amortize the
    # ~0.35us/step overhead; keep nb >= 2 for B > 128 so the "parallel" axis
    # can shard across both v7x TensorCores.
    if tb is None:
        nb = 1 if B <= 128 else max(2, pl.cdiv(B, 2048))
        tb = _round_up(pl.cdiv(max(B, 1), nb), 128)
    else:
        tb = _round_up(tb, 128)
    B_pad = _round_up(max(B, 1), tb)
    nb = B_pad // tb

    # ONE lane-packed, transposed batch operand:
    #   rows = [next(sd) | action(ad) | prev(sd) | zero-pad | latent(ld)]
    pad_rows = enc_in_pad - enc_in
    feat = jnp.concatenate(
        [next_state, actions, prev_state,
         jnp.zeros((B, pad_rows), jnp.float32), latent_state], axis=1)
    x = feat.T                                            # (in_rows, B)
    if B_pad != B:
        x = jnp.pad(x, ((0, 0), (0, B_pad - B)))

    weights = [packed["wenc"], packed["w1"], *packed["w_fc"],
               packed["wh"], packed["bias"]]

    def const_spec(arr):
        # Constant index map -> stays VMEM-resident; pipeliner skips re-fetch.
        return pl.BlockSpec(arr.shape, lambda i, _n=arr.ndim: (0,) * _n)

    in_specs = ([pl.BlockSpec((in_rows, tb), lambda i: (0, i))]
                + [const_spec(a) for a in weights])

    out = pl.pallas_call(
        _make_kernel(n_fc, enc_in_pad, packed["enc_out"], packed["widths"]),
        out_shape=jax.ShapeDtypeStruct((2, B_pad), jnp.float32),
        grid=(nb,),
        in_specs=in_specs,
        out_specs=pl.BlockSpec((2, tb), lambda i: (0, i)),
        compiler_params=pltpu.CompilerParams(
            dimension_semantics=("parallel",)),
    )(x, *weights)

    mean = out[0, :B].reshape(B, 1)
    logvar = out[1, :B].reshape(B, 1)
    return mean, logvar


def reference_forward(params, latent_state, next_state, prev_state, actions):
    """Pure-JAX reference mirroring the PyTorch module."""
    hns = _leaky_relu(next_state @ params["ws"] + params["bs"])
    ha = _leaky_relu(actions @ params["wa"] + params["ba"])
    hps = _leaky_relu(prev_state @ params["ws"] + params["bs"])
    h = jnp.concatenate([latent_state, hns, ha, hps], axis=-1)
    h = _leaky_relu(h @ params["w1"] + params["b1"])
    for li in range(len(params["widths"]) - 1):
        h = _leaky_relu(h @ params[f"w_fc{li}"] + params[f"b_fc{li}"])
    mean = h @ params["wm"] + params["bm"]
    logvar = h @ params["wv"] + params["bv"]
    return mean, logvar


if __name__ == "__main__":
    # small shapes consistent with the module
    latent_dim = 16
    state_dim = 8
    state_embed_dim = 16
    action_dim = 4
    action_embed_dim = 8
    layers = [32, 32]

    key = jax.random.PRNGKey(0)
    kp, k1, k2, k3, k4 = jax.random.split(key, 5)

    params = init_params(kp, latent_dim, state_dim, state_embed_dim,
                         action_dim, action_embed_dim, layers)
    packed = pack_params(params)

    # --- case 1: B = 8, single grid step --------------------------------
    B = 8
    latent_state = jax.random.normal(k1, (B, latent_dim), jnp.float32)
    next_state = jax.random.normal(k2, (B, state_dim), jnp.float32)
    prev_state = jax.random.normal(k3, (B, state_dim), jnp.float32)
    actions = jax.random.normal(k4, (B, action_dim), jnp.float32)

    mean, logvar = reward_decoder_forward(packed, latent_state, next_state,
                                          prev_state, actions)
    jax.block_until_ready((mean, logvar))
    ref_mean, ref_logvar = reference_forward(params, latent_state, next_state,
                                             prev_state, actions)
    assert mean.shape == (B, 1) and logvar.shape == (B, 1)
    assert jnp.allclose(mean, ref_mean, atol=1e-4, rtol=1e-4)
    assert jnp.allclose(logvar, ref_logvar, atol=1e-4, rtol=1e-4)

    # --- case 2: B not a multiple of the tile -> multi-step grid + pad ---
    B2 = 300
    l2 = jax.random.normal(k1, (B2, latent_dim), jnp.float32)
    n2 = jax.random.normal(k2, (B2, state_dim), jnp.float32)
    p2 = jax.random.normal(k3, (B2, state_dim), jnp.float32)
    a2 = jax.random.normal(k4, (B2, action_dim), jnp.float32)
    m2, v2 = reward_decoder_forward(packed, l2, n2, p2, a2, tb=128)
    jax.block_until_ready((m2, v2))
    rm2, rv2 = reference_forward(params, l2, n2, p2, a2)
    assert m2.shape == (B2, 1) and v2.shape == (B2, 1)
    assert jnp.allclose(m2, rm2, atol=1e-4, rtol=1e-4)
    assert jnp.allclose(v2, rv2, atol=1e-4, rtol=1e-4)

    print("KERNEL_OK")
</pallas_src>

<mosaic_0001>
module attributes {stable_mosaic.version = 11 : i64} {
  func.func @kernel(%arg0: i32, %arg1: memref<40x128xf32, #tpu.memory_space<vmem>>, %arg2: memref<40x24xf32, #tpu.memory_space<vmem>>, %arg3: memref<32x56xf32, #tpu.memory_space<vmem>>, %arg4: memref<32x32xf32, #tpu.memory_space<vmem>>, %arg5: memref<2x32xf32, #tpu.memory_space<vmem>>, %arg6: memref<40x4xf32, #tpu.memory_space<vmem>>, %arg7: memref<2x128xf32, #tpu.memory_space<vmem>>) attributes {dimension_semantics = [#tpu.dimension_semantics<parallel>], iteration_bounds = array<i64: 1>, scalar_prefetch = 0 : i64, scratch_operands = 0 : i64, tpu.core_type = #tpu.core_type<tc>, window_params = [{transform_indices = @transform_0, window_bounds = array<i64: 40, 128>}, {pipeline_mode = #tpu.pipeline_mode<synchronous>, transform_indices = @transform_1, window_bounds = array<i64: 40, 24>}, {pipeline_mode = #tpu.pipeline_mode<synchronous>, transform_indices = @transform_2, window_bounds = array<i64: 32, 56>}, {pipeline_mode = #tpu.pipeline_mode<synchronous>, transform_indices = @transform_3, window_bounds = array<i64: 32, 32>}, {pipeline_mode = #tpu.pipeline_mode<synchronous>, transform_indices = @transform_4, window_bounds = array<i64: 2, 32>}, {pipeline_mode = #tpu.pipeline_mode<synchronous>, transform_indices = @transform_5, window_bounds = array<i64: 40, 4>}, {transform_indices = @transform_6, window_bounds = array<i64: 2, 128>}]} {
    %c0 = arith.constant 0 : index
    %c0_0 = arith.constant 0 : index
    %0 = vector.load %arg1[%c0, %c0_0] : memref<40x128xf32, #tpu.memory_space<vmem>>, vector<40x128xf32>
    %c0_1 = arith.constant 0 : index
    %c0_2 = arith.constant 0 : index
    %1 = vector.load %arg6[%c0_1, %c0_2] : memref<40x4xf32, #tpu.memory_space<vmem>>, vector<40x4xf32>
    %2 = vector.extract_strided_slice %0 {offsets = [0, 0], sizes = [24, 128], strides = [1, 1]} : vector<40x128xf32> to vector<24x128xf32>
    %3 = vector.extract_strided_slice %0 {offsets = [24, 0], sizes = [16, 128], strides = [1, 1]} : vector<40x128xf32> to vector<16x128xf32>
    %c0_3 = arith.constant 0 : index
    %c0_4 = arith.constant 0 : index
    %4 = vector.load %arg2[%c0_3, %c0_4] : memref<40x24xf32, #tpu.memory_space<vmem>>, vector<40x24xf32>
    %cst = arith.constant dense<0.000000e+00> : vector<40x128xf32>
    %5 = tpu.matmul %4, %2, %cst {dimension_numbers = #tpu.dot_dimension_numbers<[1], [0], [0], [1], [0, 0, 1, 1], [], []>} : vector<40x24xf32>, vector<24x128xf32>, vector<40x128xf32> -> vector<40x128xf32>
    %6 = vector.extract_strided_slice %1 {offsets = [0, 0], sizes = [40, 1], strides = [1, 1]} : vector<40x4xf32> to vector<40x1xf32>
    %7 = vector.broadcast %6 : vector<40x1xf32> to vector<40x128xf32>
    %8 = arith.addf %5, %7 : vector<40x128xf32>
    %cst_5 = arith.constant 0.00999999977 : f32
    %9 = vector.broadcast %cst_5 : f32 to vector<40x128xf32>
    %10 = arith.mulf %9, %8 : vector<40x128xf32>
    %11 = arith.maximumf %8, %10 : vector<40x128xf32>
    %12 = tpu.concatenate %3, %11 in 0 : vector<16x128xf32>, vector<40x128xf32> -> vector<56x128xf32>
    %c0_6 = arith.constant 0 : index
    %c0_7 = arith.constant 0 : index
    %13 = vector.load %arg3[%c0_6, %c0_7] : memref<32x56xf32, #tpu.memory_space<vmem>>, vector<32x56xf32>
    %cst_8 = arith.constant dense<0.000000e+00> : vector<32x128xf32>
    %14 = tpu.matmul %13, %12, %cst_8 {dimension_numbers = #tpu.dot_dimension_numbers<[1], [0], [0], [1], [0, 0, 1, 1], [], []>} : vector<32x56xf32>, vector<56x128xf32>, vector<32x128xf32> -> vector<32x128xf32>
    %15 = vector.extract_strided_slice %1 {offsets = [0, 1], sizes = [32, 1], strides = [1, 1]} : vector<40x4xf32> to vector<32x1xf32>
    %16 = vector.broadcast %15 : vector<32x1xf32> to vector<32x128xf32>
    %17 = arith.addf %14, %16 : vector<32x128xf32>
    %cst_9 = arith.constant 0.00999999977 : f32
    %18 = vector.broadcast %cst_9 : f32 to vector<32x128xf32>
    %19 = arith.mulf %18, %17 : vector<32x128xf32>
    %20 = arith.maximumf %17, %19 : vector<32x128xf32>
    %c0_10 = arith.constant 0 : index
    %c0_11 = arith.constant 0 : index
    %21 = vector.load %arg4[%c0_10, %c0_11] : memref<32x32xf32, #tpu.memory_space<vmem>>, vector<32x32xf32>
    %cst_12 = arith.constant dense<0.000000e+00> : vector<32x128xf32>
    %22 = tpu.matmul %21, %20, %cst_12 {dimension_numbers = #tpu.dot_dimension_numbers<[1], [0], [0], [1], [0, 0, 1, 1], [], []>} : vector<32x32xf32>, vector<32x128xf32>, vector<32x128xf32> -> vector<32x128xf32>
    %23 = vector.extract_strided_slice %1 {offsets = [0, 2], sizes = [32, 1], strides = [1, 1]} : vector<40x4xf32> to vector<32x1xf32>
    %24 = vector.broadcast %23 : vector<32x1xf32> to vector<32x128xf32>
    %25 = arith.addf %22, %24 : vector<32x128xf32>
    %cst_13 = arith.constant 0.00999999977 : f32
    %26 = vector.broadcast %cst_13 : f32 to vector<32x128xf32>
    %27 = arith.mulf %26, %25 : vector<32x128xf32>
    %28 = arith.maximumf %25, %27 : vector<32x128xf32>
    %c0_14 = arith.constant 0 : index
    %c0_15 = arith.constant 0 : index
    %29 = vector.load %arg5[%c0_14, %c0_15] : memref<2x32xf32, #tpu.memory_space<vmem>>, vector<2x32xf32>
    %cst_16 = arith.constant dense<0.000000e+00> : vector<2x128xf32>
    %30 = tpu.matmul %29, %28, %cst_16 {dimension_numbers = #tpu.dot_dimension_numbers<[1], [0], [0], [1], [0, 0, 1, 1], [], []>} : vector<2x32xf32>, vector<32x128xf32>, vector<2x128xf32> -> vector<2x128xf32>
    %31 = vector.extract_strided_slice %1 {offsets = [0, 3], sizes = [2, 1], strides = [1, 1]} : vector<40x4xf32> to vector<2x1xf32>
    %32 = vector.broadcast %31 : vector<2x1xf32> to vector<2x128xf32>
    %33 = arith.addf %30, %32 : vector<2x128xf32>
    %c0_17 = arith.constant 0 : index
    %c0_18 = arith.constant 0 : index
    %34 = vector.load %arg7[%c0_17, %c0_18] : memref<2x128xf32, #tpu.memory_space<vmem>>, vector<2x128xf32>
    tpu.vector_store %arg7[%c0_17, %c0_18], %33 {strides = array<i32>} : memref<2x128xf32, #tpu.memory_space<vmem>>, vector<2x128xf32>,
    return
  }
  func.func @transform_0(%arg0: i32) -> (i32, i32) {
    %c0_i32 = arith.constant 0 : i32
    %c0_i32_0 = arith.constant 0 : i32
    return %c0_i32, %arg0 : i32, i32
  }
  func.func @transform_1(%arg0: i32) -> (i32, i32) {
    %c0_i32 = arith.constant 0 : i32
    %c0_i32_0 = arith.constant 0 : i32
    %c0_i32_1 = arith.constant 0 : i32
    return %c0_i32, %c0_i32_0 : i32, i32
  }
  func.func @transform_2(%arg0: i32) -> (i32, i32) {
    %c0_i32 = arith.constant 0 : i32
    %c0_i32_0 = arith.constant 0 : i32
    %c0_i32_1 = arith.constant 0 : i32
    return %c0_i32, %c0_i32_0 : i32, i32
  }
  func.func @transform_3(%arg0: i32) -> (i32, i32) {
    %c0_i32 = arith.constant 0 : i32
    %c0_i32_0 = arith.constant 0 : i32
    %c0_i32_1 = arith.constant 0 : i32
    return %c0_i32, %c0_i32_0 : i32, i32
  }
  func.func @transform_4(%arg0: i32) -> (i32, i32) {
    %c0_i32 = arith.constant 0 : i32
    %c0_i32_0 = arith.constant 0 : i32
    %c0_i32_1 = arith.constant 0 : i32
    return %c0_i32, %c0_i32_0 : i32, i32
  }
  func.func @transform_5(%arg0: i32) -> (i32, i32) {
    %c0_i32 = arith.constant 0 : i32
    %c0_i32_0 = arith.constant 0 : i32
    %c0_i32_1 = arith.constant 0 : i32
    return %c0_i32, %c0_i32_0 : i32, i32
  }
  func.func @transform_6(%arg0: i32) -> (i32, i32) {
    %c0_i32 = arith.constant 0 : i32
    %c0_i32_0 = arith.constant 0 : i32
    return %c0_i32, %arg0 : i32, i32
  }
}

</mosaic_0001>

<bundles_post_ra>
// kernel: tpu_custom_call.1
= control target key start
LH: loop header
LB: loop body
LE: loop exit
PB: predicated region body
PF: predicated region fallthrough
CT: control target
= control target key end

     0   :  { %v706_v2 = vmov 0.0|0.0   ;;  %vm707_vm0 = vmmov 0   ;;  %v708_v4 = vmov 0.0   ;;  %v709_v5 = vmov 0   ;;  %s877_s0 = inlined_call_operand.vmem [shape: f32[40,128], index: 0, kind: input, shape index: {}]   ;;  %s878_s1 = inlined_call_operand.vmem [shape: f32[40,24], index: 1, kind: input, shape index: {}]   ;;  %s879_s2 = inlined_call_operand.vmem [shape: f32[32,56], index: 2, kind: input, shape index: {}]   ;;  %s880_s3 = inlined_call_operand.vmem [shape: f32[32,32], index: 3, kind: input, shape index: {}]   ;;  %s881_s4 = inlined_call_operand.vmem [shape: f32[2,32], index: 4, kind: input, shape index: {}]   ;;  %s882_s5 = inlined_call_operand.vmem [shape: f32[40,4], index: 5, kind: input, shape index: {}]   ;;  %s883_s6 = inlined_call_operand.hbm [shape: f32[2,128], index: 6, kind: output, shape index: {}]  }
   0x1   :  { %v24_v0 = vld [vmem:[%s877_s0] sm:$0xff]  ;;  %v25_v1 = vld [vmem:[%s877_s0 + $0x8] sm:$0xff]  ;;  %637 = vmatprep.subr.bf16.mxu0 %v706_v2  ;;  %577 = vmatprep.mubr.msk.f32.mxu0 %vm707_vm0, %v708_v4  ;;  %v766_v7 = vld [vmem:[%s882_s5 + $0x10] sm:$0xff] }
   0x2   :  { %v638_v3 = vpack.c.bf16 %v25_v1, %v24_v0  ;;  %674 = vset.pattern.permute.xlu0 %v709_v5  ;;  %v760_v6 = vld [vmem:[%s882_s5] sm:$0xff]  ;;  %675 = vset.pattern.permute.xlu1 %v709_v5  ;;  %v26_v8 = vld [vmem:[%s877_s0 + $0x10] sm:$0xff]  ;;  %v774_v9 = vld [vmem:[%s882_s5 + $0x8] sm:$0xff] }
   0x3   :  { %41 = vperm.xlu0 %674, %v760_v6   ;;  %51 = vperm.xlu1 %675, %v766_v7  }
   0x4   :  { %639 = vmatpush3.bf16.msra.mxu0 %v638_v3 }
   0x5   :  { %575 = vmatprep.subr.mxu0 %v708_v4 }
   0x6   :  { %11 = vsyncpa [#allocation3], 0  ;;  %v34_v10 = vld [vmem:[%s878_s1] sm:$0xff]  ;;  %vm64_vm1 = vcmask 195584   ;;  %v783_v11 = vld [vmem:[%s882_s5 + $0x18] sm:$0xff]  ;;  %vm200_vm2 = vcmask 457728  }
   0x7   :  { %46 = vperm.xlu0 %674, %v774_v9   ;;  %v33_v12 = vld [vmem:[%s882_s5 + $0x20] sm:$0xff]  ;;  %56 = vperm.xlu1 %675, %v783_v11   ;;  %v35_v13 = vld [vmem:[%s878_s1 + $0x8] sm:$0xff]  ;;  %v36_v14 = vld [vmem:[%s878_s1 + $0x10] sm:$0xff]  ;;  %v710_v21 = vmov 1   ;;  %vm326_vm3 = vcmask 261120   ;;  %v711_v58 = vmov 2  }
   0x8   :  { %576 = vmatpush3.msra.mxu0 %v26_v8  ;;  %v37_v15 = vld [vmem:[%s878_s1 + $0x18] sm:$0xff]  ;;  %v38_v16 = vld [vmem:[%s878_s1 + $0x20] sm:$0xff]  ;;  %v181_v54 = vld [vmem:[%s879_s2 + $0x8] sm:$0xff]  ;;  %s713_s16 = smov [#allocation2]  }
   0x9   :  { %578 = vmatmul.mubr.msk.f32.vlgmr.msra.gmra.mrb[0].mxu0 %vm64_vm1, %v34_v10  ;;  %660 = vmatprep.subr.bf16.mxu0 %v706_v2  ;;  %v27_v17 = vld [vmem:[%s877_s0 + $0x18] sm:$0xff]  ;;  %v28_v18 = vld [vmem:[%s877_s0 + $0x20] sm:$0xff]  ;;  %v182_v55 = vld [vmem:[%s879_s2 + $0x10] sm:$0xff]  ;;  %s517_s17 = sshll.u32 %s713_s16, 4  ;;  %s518_s17 = int_to_ptr.vmem [resolvable:$true] %s517_s17 }
   0xa   :  { %580 = vmatprep.mubr.msk.f32.mxu0 %vm707_vm0, %v708_v4  ;;  %v640_v19 = vpack.c.bf16 %v28_v18, %v27_v17  ;;  %v180_v20 = vld [vmem:[%s879_s2] sm:$0xff]  ;;  %v183_v56 = vld [vmem:[%s879_s2 + $0x18] sm:$0xff]  ;;  %s682_s18 = scalar_lea.vmem %s518_s17, 32  ;;  %p687_p1 = scmp.lt.s32.totalorder %s518_s17, %s518_s17 }
   0xb   :  { %61 = vperm.xlu0 %674, %v33_v12   ;;  %606 = vmatprep.mubr.msk.f32.mxu1 %vm200_vm2, %v180_v20  ;;  %v306_v57 = vld [vmem:[%s880_s3] sm:$0xff]  ;;  %v308_v20 = vld [vmem:[%s880_s3 + $0x10] sm:$0xff]  ;;  %p683_p0 = scmp.ne.s32.totalorder %s518_s17, %s682_s18  ;;  %p688_p2 = scmp.lt.s32.totalorder %s682_s18, %s682_s18 }
   0xc   :  { %641 = vmatprep.subr.bf16.mxu1 %v640_v19  ;;  %676 = vset.pattern.permute.xlu1 %v710_v21 }
   0xd   :  { %581 = vmatmul.mubr.msk.f32.gmra.mrb[2].mxu0 %vm64_vm1, %v35_v13  ;;  %643 = vmatpush3.bf16.msra.mxu1 %v640_v19  ;;  %v307_v19 = vld [vmem:[%s880_s3 + $0x8] sm:$0xff]  ;;  %p689_p3 = por %p688_p2, %p687_p1 }
   0xe   :  { %583 = vmatprep.mubr.msk.f32.mxu0 %vm707_vm0, %v708_v4  ;;  %185 = vperm.xlu1 %676, %v760_v6  }
   0xf   :  { %677 = vset.pattern.permute.xlu0 %v710_v21  ;;  %v309_v21 = vld [vmem:[%s880_s3 + $0x18] sm:$0xff]  ;;  %p690_p4 = pnand %p689_p3, %p683_p0 }
  0x10   :  { %189 = vperm.xlu0 %677, %v774_v9  }
  0x11   :  { %584 = vmatmul.mubr.msk.f32.gmra.mrb[4].mxu0 %vm64_vm1, %v36_v14 }
  0x12   :  { %586 = vmatprep.mubr.msk.f32.mxu0 %vm707_vm0, %v708_v4  ;;  %193 = vperm.xlu1 %676, %v766_v7  }
  0x14   :  { %678 = vset.pattern.permute.xlu0 %v711_v58 }
  0x15   :  { %587 = vmatmul.mubr.msk.f32.gmra.mrb[6].mxu0 %vm64_vm1, %v37_v15  ;;  %311 = vperm.xlu0 %678, %v760_v6  }
  0x16   :  { %589 = vmatprep.mubr.msk.f32.mxu0 %vm707_vm0, %v708_v4  ;;  %197 = vperm.xlu1 %676, %v783_v11  }
  0x19   :  { %590 = vmatmul.mubr.msk.f32.gmra.mrb[8].mxu0 %vm64_vm1, %v38_v16  ;;  %323 = vperm.xlu0 %678, %v783_v11  }
  0x1a   :  { %634 = vmatprep.mubr.msk.f32.mxu0 %vm707_vm0, %v708_v4  ;;  %679 = vset.pattern.permute.xlu1 %v711_v58 }
  0x1b   :  { %315 = vperm.xlu1 %679, %v774_v9  }
  0x1f   :  { %319 = vperm.xlu1 %679, %v766_v7  }
  0x82   :  { %v42_v22 = vpop.permute.xlu0 %41  ;;  %v52_v31 = vpop.permute.xlu1 %51 }
  0x86   :  { %v47_v26 = vpop.permute.xlu0 %46  ;;  %v57_v39 = vpop.permute.xlu1 %56 }
  0x8a   :  { %v62_v45 = vpop.permute.xlu0 %61 }
  0x8d   :  { %v186_v59 = vpop.permute.xlu1 %185 }
  0x8f   :  { %v190_v61 = vpop.permute.xlu0 %189 }
  0x91   :  { %v194_v60 = vpop.permute.xlu1 %193 }
  0x95   :  { %v198_v4 = vpop.permute.xlu1 %197 }
  0xdc   :  { %v146_v23 = vpop.f32.mrb[0].mxu0 }
  0xdd   :  { %v147_v24 = vadd.f32 %v146_v23, %v42_v22  ;;  %v579_v25 = vpop.f32.mrb[1].mxu0  ;;  %v712_v22 = vmov 3   ;;  %v312_v23 = vpop.permute.xlu0 %311 }
  0xde   :  { %680 = vset.pattern.permute.xlu1 %v712_v22  ;;  %681 = vset.pattern.permute.xlu0 %v712_v22 }
  0xdf   :  { %v170_v28 = vmul.f32 0.01, %v147_v24  ;;  %434 = vperm.xlu1 %680, %v760_v6  }
  0xe0   :  { %v151_v27 = vpop.f32.mrb[2].mxu0 }
  0xe1   :  { %v152_v29 = vadd.f32 %v151_v27, %v47_v26  ;;  %v582_v30 = vpop.f32.mrb[3].mxu0  ;;  %v175_v34 = vmax.f32 %v147_v24, %v170_v28  ;;  %v316_v24 = vpop.permute.xlu1 %315 }
  0xe2   :  { %v324_v30 = vpop.permute.xlu0 %323 }
  0xe3   :  { %v171_v32 = vmul.f32 0.01, %v152_v29 }
  0xe4   :  { %v156_v33 = vpop.f32.mrb[4].mxu0 }
  0xe5   :  { %v176_v35 = vmax.f32 %v152_v29, %v171_v32  ;;  %v157_v36 = vadd.f32 %v156_v33, %v52_v31  ;;  %v585_v37 = vpop.f32.mrb[5].mxu0 }
  0xe7   :  { %v644_v38 = vpack.c.bf16 %v176_v35, %v175_v34  ;;  %v172_v41 = vmul.f32 0.01, %v157_v36  ;;  %v320_v34 = vpop.permute.xlu1 %319 }
  0xe8   :  { %v161_v40 = vpop.f32.mrb[6].mxu0 }
  0xe9   :  { %v162_v42 = vadd.f32 %v161_v40, %v57_v39  ;;  %v588_v43 = vpop.f32.mrb[7].mxu0  ;;  %645 = vmatprep.subr.bf16.mxu1 %v644_v38  ;;  %v177_v47 = vmax.f32 %v157_v36, %v172_v41 }
  0xea   :  { %647 = vmatpush3.bf16.msra.mxu1 %v644_v38 }
  0xeb   :  { %v173_v44 = vmul.f32 0.01, %v162_v42 }
  0xec   :  { %v166_v46 = vpop.f32.mrb[8].mxu0 }
  0xed   :  { %v178_v48 = vmax.f32 %v162_v42, %v173_v44  ;;  %v167_v49 = vadd.f32 %v166_v46, %v62_v45  ;;  %v591_v50 = vpop.f32.mrb[9].mxu0  ;;  %v432_v44 = vld [vmem:[%s881_s4] sm:$0x3] }
  0xef   :  { %v174_v51 = vmul.f32 0.01, %v167_v49  ;;  %v648_v52 = vpack.c.bf16 %v178_v48, %v177_v47 }
  0xf1   :  { %v179_v53 = vmax.f32 %v167_v49, %v174_v51  ;;  %649 = vmatprep.subr.bf16.mxu1 %v648_v52 }
  0xf2   :  { %651 = vmatpush3.bf16.msra.mxu1 %v648_v52 }
  0xf3   :  { %604 = vmatprep.subr.mxu1 %v179_v53 }
  0xf6   :  { %605 = vmatpush3.msra.mxu1 %v179_v53 }
  0xf7   :  { %607 = vmatmul.mubr.msk.f32.vlgmr.msra.gmra.mrb[0].mxu1 %vm200_vm2, %v181_v54 }
  0xf8   :  { %609 = vmatprep.mubr.msk.f32.mxu1 %vm200_vm2, %v182_v55 }
  0xfb   :  { %610 = vmatmul.mubr.msk.f32.gmra.mrb[2].mxu1 %vm200_vm2, %v183_v56 }
  0xfc   :  { %620 = vmatprep.mubr.msk.f32.mxu1 %vm326_vm3, %v306_v57 }
 0x15e   :  { %v435_v45 = vpop.permute.xlu1 %434 }
 0x1ca   :  { %v608_v62 = vpop.f32.mrb[0].mxu1 }
 0x1cb   :  { %v285_v63 = vadd.f32 %v608_v62, %v190_v61  ;;  %v279_v0 = vpop.f32.mrb[1].mxu1 }
 0x1cc   :  { %v280_v1 = vadd.f32 %v279_v0, %v186_v59 }
 0x1cd   :  { %v299_v3 = vmul.f32 0.01, %v285_v63 }
 0x1ce   :  { %v298_v5 = vmul.f32 0.01, %v280_v1  ;;  %v611_v8 = vpop.f32.mrb[2].mxu1 }
 0x1cf   :  { %v303_v10 = vmax.f32 %v285_v63, %v299_v3  ;;  %v295_v12 = vadd.f32 %v611_v8, %v198_v4  ;;  %v289_v9 = vpop.f32.mrb[3].mxu1 }
 0x1d0   :  { %v302_v13 = vmax.f32 %v280_v1, %v298_v5  ;;  %v290_v14 = vadd.f32 %v289_v9, %v194_v60 }
 0x1d1   :  { %v301_v15 = vmul.f32 0.01, %v295_v12 }
 0x1d2   :  { %v300_v7 = vmul.f32 0.01, %v290_v14  ;;  %v652_v16 = vpack.c.bf16 %v303_v10, %v302_v13 }
 0x1d3   :  { %v305_v11 = vmax.f32 %v295_v12, %v301_v15 }
 0x1d4   :  { %v304_v17 = vmax.f32 %v290_v14, %v300_v7  ;;  %653 = vmatprep.subr.bf16.mxu1 %v652_v16 }
 0x1d5   :  { %655 = vmatpush3.bf16.msra.mxu1 %v652_v16 }
 0x1d6   :  { %v656_v18 = vpack.c.bf16 %v305_v11, %v304_v17 }
 0x1d8   :  { %657 = vmatprep.subr.bf16.mxu1 %v656_v18 }
 0x1d9   :  { %659 = vmatpush3.bf16.msra.mxu1 %v656_v18 }
 0x1dc   :  { %621 = vmatmul.mubr.msk.f32.vlgmr.msra.gmra.mrb[4].mxu1 %vm326_vm3, %v307_v19 }
 0x1dd   :  { %623 = vmatprep.mubr.msk.f32.mxu1 %vm326_vm3, %v308_v20 }
 0x1e0   :  { %624 = vmatmul.mubr.msk.f32.gmra.mrb[6].mxu1 %vm326_vm3, %v309_v21 }
 0x2af   :  { %v622_v25 = vpop.f32.mrb[4].mxu1 }
 0x2b0   :  { %v411_v26 = vadd.f32 %v622_v25, %v316_v24  ;;  %v405_v27 = vpop.f32.mrb[5].mxu1 }
 0x2b1   :  { %v406_v28 = vadd.f32 %v405_v27, %v312_v23 }
 0x2b2   :  { %v425_v29 = vmul.f32 0.01, %v411_v26 }
 0x2b3   :  { %v424_v31 = vmul.f32 0.01, %v406_v28  ;;  %v625_v32 = vpop.f32.mrb[6].mxu1 }
 0x2b4   :  { %v429_v33 = vmax.f32 %v411_v26, %v425_v29  ;;  %v421_v35 = vadd.f32 %v625_v32, %v324_v30  ;;  %v415_v36 = vpop.f32.mrb[7].mxu1 }
 0x2b5   :  { %v428_v37 = vmax.f32 %v406_v28, %v424_v31  ;;  %v416_v38 = vadd.f32 %v415_v36, %v320_v34 }
 0x2b6   :  { %v427_v39 = vmul.f32 0.01, %v421_v35 }
 0x2b7   :  { %v661_v40 = vpack.c.bf16 %v429_v33, %v428_v37  ;;  %v426_v41 = vmul.f32 0.01, %v416_v38 }
 0x2b8   :  { %v431_v6 = vmax.f32 %v421_v35, %v427_v39 }
 0x2b9   :  { %v430_v42 = vmax.f32 %v416_v38, %v426_v41  ;;  %662 = vmatpush3.bf16.msra.mxu0 %v661_v40 }
 0x2ba   :  { %663 = vmatprep.subr.bf16.mxu0 %v706_v2 }
 0x2bb   :  { %v664_v43 = vpack.c.bf16 %v431_v6, %v430_v42 }
 0x2bd   :  { %665 = vmatpush3.bf16.msra.mxu0 %v664_v43 }
 0x2c0   :  { %635 = vmatmul.mubr.msk.f32.vlgmr.msra.gmra.mrb[10].mxu0 %vm326_vm3, %v432_v44 }
 0x393   :  { %v506_v46 = vpop.f32.mrb[10].mxu0 }
 0x394   :  { %v507_v47 = vadd.f32 %v506_v46, %v435_v45  ;;  %v636_v48 = vpop.f32.mrb[11].mxu0 }
 0x396   :  { %510 = vst [vmem:[#allocation2] sm:$0x3] %v507_v47 }
 0x397   :  { %693 = shalt.err (!%p690_p4)
}
 0x398   :  { %s694_s4 = scalar_lea.hbm %s883_s6, 32 }
 0x399   :  { %p695_p5 = scmp.ne.s32.totalorder %s883_s6, %s694_s4  ;;  %p698_p6 = scmp.lt.u32.totalorder %s694_s4, %s883_s6 }
 0x39b   :  { %p700_p7 = pnand %p698_p6, %p695_p5 }
 0x39d   :  { %703 = shalt.err (!%p700_p7)
}
 0x39e   :  { %520 = dma.vmem_to_hbm [thread:$0]  %s518_s17, 32, %s883_s6, [#allocation3]  }
 0x39f   :  { %704 = dma.done.wait [#allocation3], 32  }
 0x3a0   :  { %705 = vsyncadd [#allocation3], 4294967264 }
 0x3a1   :  { %524 = vsyncpa [#allocation3], 1 }

</bundles_post_ra>
